<compile_context>
chip_gen: v7x
topology: tpu7x:2x2x1
jax: 0.10.0
libtpu: 0.0.40
codegen_flags: <defaults>
</compile_context>

<pallas_src>
import functools

import numpy as np
import jax
import jax.numpy as jnp
from jax.experimental import pallas as pl
from jax.experimental.pallas import tpu as pltpu

_LANES = 128
_SUBLANES = 8
_MAX_BLOCK_ROWS = 512  # 512*128*4 B = 256 KiB per f32 block


# ------------------------------ Pallas kernel -------------------------------

def _balance_l1_kernel(pred_ref, gt_ref, mask_ref, neg_ref, stats_ref):
    # pred/gt/mask/neg: (block_rows, 128) f32 tiles; stats: (1, 8, 128) f32.
    p = pred_ref[...]
    g = gt_ref[...]
    m = mask_ref[...]

    diff = jnp.abs(p - g)
    pos = diff * m
    neg_ref[...] = diff - pos          # == diff * (1 - m), one fewer multiply

    pos_part = jnp.sum(pos)            # partial positive-loss sum (this block)
    msk_part = jnp.sum(m)              # partial mask sum (this block)

    lane = jax.lax.broadcasted_iota(jnp.int32, (1, _SUBLANES, _LANES), 2)
    stats_ref[...] = jnp.where(lane == 0, pos_part,
                               jnp.where(lane == 1, msk_part, 0.0))


# ------------------------------ host wrapper --------------------------------

@functools.partial(jax.jit, static_argnames=("negative_ratio",))
def _balance_l1_forward(pred, gt, mask, *, negative_ratio):
    pred = pred.astype(jnp.float32)
    gt = gt.astype(jnp.float32)
    mask = mask.astype(jnp.float32)

    n, _, h, w = pred.shape
    total = n * h * w

    # Lane-dense layout: flatten to length total, pad, reshape to (rows, 128).
    rows = pl.cdiv(total, _LANES)
    rows = ((rows + _SUBLANES - 1) // _SUBLANES) * _SUBLANES
    block_rows = min(_MAX_BLOCK_ROWS, rows)
    rows = ((rows + block_rows - 1) // block_rows) * block_rows
    grid = rows // block_rows
    total_pad = rows * _LANES

    def to_lane_dense(x):
        xf = x.reshape(-1)
        # Zero padding: contributes 0 to positive sum and mask sum, and the
        # padded "negative" values are exactly 0 (never beat real negatives).
        return jnp.pad(xf, (0, total_pad - total)).reshape(rows, _LANES)

    p2 = to_lane_dense(pred[:, 0])
    g2 = to_lane_dense(gt)
    m2 = to_lane_dense(mask)

    io_spec = pl.BlockSpec((block_rows, _LANES), lambda i: (i, 0))

    neg_map, stats = pl.pallas_call(
        _balance_l1_kernel,
        out_shape=(
            jax.ShapeDtypeStruct((rows, _LANES), jnp.float32),
            jax.ShapeDtypeStruct((grid, _SUBLANES, _LANES), jnp.float32),
        ),
        grid_spec=pltpu.PrefetchScalarGridSpec(
            num_scalar_prefetch=0,
            grid=(grid,),
            in_specs=[io_spec, io_spec, io_spec],
            out_specs=(
                io_spec,
                pl.BlockSpec((1, _SUBLANES, _LANES), lambda i: (i, 0, 0)),
            ),
        ),
        compiler_params=pltpu.CompilerParams(
            dimension_semantics=("parallel",),
        ),
    )(p2, g2, m2)

    pos_sum = jnp.sum(stats[:, 0, 0])
    mask_sum = jnp.sum(stats[:, 0, 1])

    # int(...) in the reference truncates; sums are non-negative so floor == trunc.
    positive_count = jnp.floor(mask_sum).astype(jnp.int32)
    negative_avail = jnp.floor(float(total) - mask_sum).astype(jnp.int32)
    negative_count = jnp.minimum(
        negative_avail,
        jnp.floor(positive_count.astype(jnp.float32) * negative_ratio).astype(jnp.int32),
    )

    # TODO(synk): data-dependent top-k has no Pallas sort primitive; use an
    # on-device XLA sort + dynamic prefix mask (no host round-trip).
    neg_sorted = -jnp.sort(-neg_map.reshape(-1))
    prefix = jnp.arange(neg_sorted.shape[0], dtype=jnp.int32) < negative_count
    negative_loss = jnp.sum(jnp.where(prefix, neg_sorted, 0.0)) \
        / negative_count.astype(jnp.float32)
    positive_loss = pos_sum / positive_count.astype(jnp.float32)

    return positive_loss + negative_loss, positive_loss, negative_loss


class BalanceL1Loss:
    """Balanced (OHEM-style) L1 loss — Pallas-backed port of the PyTorch module."""

    def __init__(self, negative_ratio=3.0):
        self.negative_ratio = float(negative_ratio)

    def forward(self, pred, gt, mask):
        """
        Args:
            pred: (N, 1, H, W)
            gt:   (N, H, W)
            mask: (N, H, W)
        Returns:
            (loss, dict(l1_loss=..., nge_l1_loss=...))
        """
        total, positive_loss, negative_loss = _balance_l1_forward(
            jnp.asarray(pred), jnp.asarray(gt), jnp.asarray(mask),
            negative_ratio=self.negative_ratio)
        return total, dict(l1_loss=positive_loss, nge_l1_loss=negative_loss)

    __call__ = forward


# ------------------------------ reference check -----------------------------

def _reference(pred, gt, mask, negative_ratio=3.0):
    pred = np.asarray(pred, np.float64)
    gt = np.asarray(gt, np.float64)
    mask = np.asarray(mask, np.float64)
    loss = np.abs(pred[:, 0] - gt)
    positive = loss * mask
    negative = loss * (1.0 - mask)
    positive_count = int(mask.sum())
    negative_count = min(int((1.0 - mask).sum()),
                         int(positive_count * negative_ratio))
    neg_sorted = np.sort(negative.reshape(-1))[::-1]
    negative_loss = neg_sorted[:negative_count].sum() / negative_count
    positive_loss = positive.sum() / positive_count
    return positive_loss + negative_loss, positive_loss, negative_loss


# ---------------------------------- demo ------------------------------------

if __name__ == "__main__":
    N, H, W = 2, 16, 16
    key = jax.random.PRNGKey(0)
    k1, k2, k3 = jax.random.split(key, 3)

    pred = jax.random.uniform(k1, (N, 1, H, W), dtype=jnp.float32)
    gt = (jax.random.uniform(k2, (N, H, W), dtype=jnp.float32) > 0.7).astype(jnp.float32)
    # ~60% positive mask: guarantees both positive_count > 0 and negative_count > 0.
    mask = (jax.random.uniform(k3, (N, H, W), dtype=jnp.float32) > 0.4).astype(jnp.float32)

    loss_mod = BalanceL1Loss(negative_ratio=3.0)
    total_loss, metrics = loss_mod(pred, gt, mask)
    total_loss = jax.block_until_ready(total_loss)

    ref_total, ref_pos, ref_neg = _reference(pred, gt, mask, 3.0)
    assert np.isfinite(float(total_loss))
    np.testing.assert_allclose(float(total_loss), ref_total, rtol=1e-4, atol=1e-5)
    np.testing.assert_allclose(float(metrics["l1_loss"]), ref_pos, rtol=1e-4, atol=1e-5)
    np.testing.assert_allclose(float(metrics["nge_l1_loss"]), ref_neg, rtol=1e-4, atol=1e-5)

    print("KERNEL_OK")
</pallas_src>

<mosaic_0001>
module attributes {stable_mosaic.version = 11 : i64} {
  func.func @_balance_l1_kernel(%arg0: i32, %arg1: memref<8x128xf32, #tpu.memory_space<vmem>>, %arg2: memref<8x128xf32, #tpu.memory_space<vmem>>, %arg3: memref<8x128xf32, #tpu.memory_space<vmem>>, %arg4: memref<8x128xf32, #tpu.memory_space<vmem>>, %arg5: memref<1x8x128xf32, #tpu.memory_space<vmem>>) attributes {dimension_semantics = [#tpu.dimension_semantics<parallel>], iteration_bounds = array<i64: 1>, scalar_prefetch = 0 : i64, scratch_operands = 0 : i64, tpu.core_type = #tpu.core_type<tc>, window_params = [{transform_indices = @transform_0, window_bounds = array<i64: 8, 128>}, {transform_indices = @transform_1, window_bounds = array<i64: 8, 128>}, {transform_indices = @transform_2, window_bounds = array<i64: 8, 128>}, {transform_indices = @transform_3, window_bounds = array<i64: 8, 128>}, {transform_indices = @transform_4, window_bounds = array<i64: 1, 8, 128>}]} {
    %c0 = arith.constant 0 : index
    %c0_0 = arith.constant 0 : index
    %0 = vector.load %arg1[%c0, %c0_0] : memref<8x128xf32, #tpu.memory_space<vmem>>, vector<8x128xf32>
    %c0_1 = arith.constant 0 : index
    %c0_2 = arith.constant 0 : index
    %1 = vector.load %arg2[%c0_1, %c0_2] : memref<8x128xf32, #tpu.memory_space<vmem>>, vector<8x128xf32>
    %c0_3 = arith.constant 0 : index
    %c0_4 = arith.constant 0 : index
    %2 = vector.load %arg3[%c0_3, %c0_4] : memref<8x128xf32, #tpu.memory_space<vmem>>, vector<8x128xf32>
    %3 = arith.subf %0, %1 : vector<8x128xf32>
    %4 = math.absf %3 : vector<8x128xf32>
    %5 = arith.mulf %4, %2 : vector<8x128xf32>
    %6 = arith.subf %4, %5 : vector<8x128xf32>
    %c0_5 = arith.constant 0 : index
    %c0_6 = arith.constant 0 : index
    %7 = vector.load %arg4[%c0_5, %c0_6] : memref<8x128xf32, #tpu.memory_space<vmem>>, vector<8x128xf32>
    tpu.vector_store %arg4[%c0_5, %c0_6], %6 {strides = array<i32>} : memref<8x128xf32, #tpu.memory_space<vmem>>, vector<8x128xf32>,
    %8 = vector.shape_cast %5 : vector<8x128xf32> to vector<1x8x128xf32>
    %cst = arith.constant dense<0.000000e+00> : vector<1xf32>
    %9 = vector.multi_reduction <add>, %8, %cst [1, 2] : vector<1x8x128xf32> to vector<1xf32>
    %10 = vector.shape_cast %9 : vector<1xf32> to vector<1x1x1xf32>
    %11 = vector.extract %10[0, 0, 0] : f32 from vector<1x1x1xf32>
    %12 = vector.shape_cast %2 : vector<8x128xf32> to vector<1x8x128xf32>
    %cst_7 = arith.constant dense<0.000000e+00> : vector<1xf32>
    %13 = vector.multi_reduction <add>, %12, %cst_7 [1, 2] : vector<1x8x128xf32> to vector<1xf32>
    %14 = vector.shape_cast %13 : vector<1xf32> to vector<1x1x1xf32>
    %15 = vector.extract %14[0, 0, 0] : f32 from vector<1x1x1xf32>
    %16 = tpu.iota {dimensions = array<i32: 2>} : vector<1x8x128xi32>
    %c0_i32 = arith.constant 0 : i32
    %17 = vector.broadcast %c0_i32 : i32 to vector<1x8x128xi32>
    %18 = arith.cmpi eq, %16, %17 : vector<1x8x128xi32>
    %c1_i32 = arith.constant 1 : i32
    %19 = vector.broadcast %c1_i32 : i32 to vector<1x8x128xi32>
    %20 = arith.cmpi eq, %16, %19 : vector<1x8x128xi32>
    %cst_8 = arith.constant 0.000000e+00 : f32
    %21 = vector.broadcast %15 : f32 to vector<1x8x128xf32>
    %22 = vector.broadcast %cst_8 : f32 to vector<1x8x128xf32>
    %23 = arith.select %20, %21, %22 : vector<1x8x128xi1>, vector<1x8x128xf32>
    %24 = vector.broadcast %11 : f32 to vector<1x8x128xf32>
    %25 = arith.select %18, %24, %23 : vector<1x8x128xi1>, vector<1x8x128xf32>
    %c0_9 = arith.constant 0 : index
    %c0_10 = arith.constant 0 : index
    %c0_11 = arith.constant 0 : index
    %26 = vector.load %arg5[%c0_9, %c0_10, %c0_11] : memref<1x8x128xf32, #tpu.memory_space<vmem>>, vector<1x8x128xf32>
    tpu.vector_store %arg5[%c0_9, %c0_10, %c0_11], %25 {strides = array<i32>} : memref<1x8x128xf32, #tpu.memory_space<vmem>>, vector<1x8x128xf32>,
    return
  }
  func.func @transform_0(%arg0: i32) -> (i32, i32) {
    %c0_i32 = arith.constant 0 : i32
    %c0_i32_0 = arith.constant 0 : i32
    return %arg0, %c0_i32 : i32, i32
  }
  func.func @transform_1(%arg0: i32) -> (i32, i32) {
    %c0_i32 = arith.constant 0 : i32
    %c0_i32_0 = arith.constant 0 : i32
    return %arg0, %c0_i32 : i32, i32
  }
  func.func @transform_2(%arg0: i32) -> (i32, i32) {
    %c0_i32 = arith.constant 0 : i32
    %c0_i32_0 = arith.constant 0 : i32
    return %arg0, %c0_i32 : i32, i32
  }
  func.func @transform_3(%arg0: i32) -> (i32, i32) {
    %c0_i32 = arith.constant 0 : i32
    %c0_i32_0 = arith.constant 0 : i32
    return %arg0, %c0_i32 : i32, i32
  }
  func.func @transform_4(%arg0: i32) -> (i32, i32, i32) {
    %c0_i32 = arith.constant 0 : i32
    %c0_i32_0 = arith.constant 0 : i32
    %c0_i32_1 = arith.constant 0 : i32
    return %arg0, %c0_i32, %c0_i32_0 : i32, i32, i32
  }
}

</mosaic_0001>

<bundles_post_ra>
// kernel: squeeze.3
= control target key start
LH: loop header
LB: loop body
LE: loop exit
PB: predicated region body
PF: predicated region fallthrough
CT: control target
= control target key end

     0   :  { %s67_s8 = smov 112   ;;  %s68_s11 = smov 80   ;;  %vm3_vm0 = vcmask 130048   ;;  %vm9_vm1 = vcmask 1048448   ;;  %vm15_vm2 = vcmask 917248   ;;  %vm21_vm3 = vcmask 786048   ;;  %s111_s0 = inlined_call_operand.vmem [shape: f32[2,1,16,16], index: 0, kind: input, shape index: {}]   ;;  %s112_s1 = inlined_call_operand.vmem [shape: f32[512], index: 1, kind: output, shape index: {}]  }
   0x1   :  { %v53_v0 = vld [vmem:[%s111_s0 + $0x7] ss:$8 sm:$0xf]   ;;  %v55_v1 = vld [vmem:[%s111_s0 + $0x5] ss:$8 sm:$0xf]  }
   0x2   :  { %7 = vrot.lane.b32.xlu0 %v53_v0, %s67_s8  ;;  %19 = vrot.lane.b32.xlu1 %v55_v1, %s68_s11  ;;  %v54_v2 = vld [vmem:[%s111_s0 + $0x6] ss:$8 sm:$0xf]   ;;  %v56_v3 = vld [vmem:[%s111_s0 + $0x4] ss:$8 sm:$0xf]  }
   0x3   :  { %s69_s16 = smov 96   ;;  %v2_v4 = vld [vmem:[%s111_s0] ss:$8 sm:$0xf]   ;;  %s70_s19 = smov 64   ;;  %vm27_vm4 = vcmask 654848  }
   0x4   :  { %v57_v5 = vld [vmem:[%s111_s0 + $0x3] ss:$8 sm:$0xf]   ;;  %4 = vst.msk [vmem:[#allocation0] sm:$0xf] %vm3_vm0, %v2_v4   ;;  %s71_s24 = smov 48  }
   0x5   :  { %v58_v6 = vld [vmem:[%s111_s0 + $0x2] ss:$8 sm:$0xf]   ;;  %s72_s25 = smov 32   ;;  %vm33_vm5 = vcmask 523648   ;;  %vm39_vm6 = vcmask 392448  }
   0x6   :  { %13 = vrot.lane.b32.xlu0 %v54_v2, %s69_s16  ;;  %25 = vrot.lane.b32.xlu1 %v56_v3, %s70_s19  ;;  %v59_v7 = vld [vmem:[%s111_s0 + $0x1] ss:$8 sm:$0xf]   ;;  %s73_s0 = smov 16   ;;  %vm45_vm7 = vcmask 261248  }
   0xa   :  { %31 = vrot.lane.b32.xlu0 %v57_v5, %s71_s24  ;;  %37 = vrot.lane.b32.xlu1 %v58_v6, %s72_s25 }
   0xe   :  { %43 = vrot.lane.b32.xlu0 %v59_v7, %s73_s0 }
  0x74   :  { %v8_v8 = vpop.permute.xlu0 %7   ;;  %v20_v9 = vpop.permute.xlu1 %19  }
  0x75   :  { %10 = vst.msk [vmem:[#allocation0] sm:$0xf] %vm9_vm1, %v8_v8  }
  0x78   :  { %v14_v10 = vpop.permute.xlu0 %13   ;;  %v26_v11 = vpop.permute.xlu1 %25  }
  0x79   :  { %16 = vst.msk [vmem:[#allocation0] sm:$0xf] %vm15_vm2, %v14_v10  }
  0x7a   :  { %22 = vst.msk [vmem:[#allocation0] sm:$0xf] %vm21_vm3, %v20_v9  }
  0x7b   :  { %28 = vst.msk [vmem:[#allocation0] sm:$0xf] %vm27_vm4, %v26_v11  }
  0x7c   :  { %v32_v12 = vpop.permute.xlu0 %31   ;;  %v38_v13 = vpop.permute.xlu1 %37  }
  0x7d   :  { %34 = vst.msk [vmem:[#allocation0] sm:$0xf] %vm33_vm5, %v32_v12  }
  0x7e   :  { %40 = vst.msk [vmem:[#allocation0] sm:$0xf] %vm39_vm6, %v38_v13  }
  0x80   :  { %v44_v14 = vpop.permute.xlu0 %43  }
  0x81   :  { %46 = vst.msk [vmem:[#allocation0] sm:$0xf] %vm45_vm7, %v44_v14  }
  0x88   :  { %v50_v15 = vld [vmem:[#allocation0] sm:$0xf] }
  0x89   :  { %52 = vst [vmem:[%s112_s1] sm:$0xf] %v50_v15 }

// kernel: _balance_l1_forward.1
= control target key start
LH: loop header
LB: loop body
LE: loop exit
PB: predicated region body
PF: predicated region fallthrough
CT: control target
= control target key end

     0   :  { %v42_v21 = vlaneseq  ;;  %s103_s0 = inlined_call_operand.vmem [shape: f32[8,128], index: 0, kind: input, shape index: {}]   ;;  %s104_s1 = inlined_call_operand.vmem [shape: f32[8,128], index: 1, kind: input, shape index: {}]   ;;  %s105_s2 = inlined_call_operand.vmem [shape: f32[8,128], index: 2, kind: input, shape index: {}]   ;;  %s106_s3 = inlined_call_operand.vmem [shape: f32[8,128], index: 3, kind: output, shape index: {0}]   ;;  %s107_s4 = inlined_call_operand.vmem [shape: f32[1,8,128], index: 4, kind: output, shape index: {1}]  }
   0x1   :  { %v16_v0 = vld [vmem:[%s103_s0] sm:$0xff] }
   0x2   :  { %v17_v1 = vld [vmem:[%s104_s1] sm:$0xff]  ;;  %v43_v22 = vand.u32 127, %v42_v21 }
   0x3   :  { %v19_v2 = vsub.f32 %v16_v0, %v17_v1  ;;  %v18_v3 = vld [vmem:[%s105_s2] sm:$0xff] }
   0x4   :  { %vm45_vm0 = vcmp.eq.s32.totalorder %v43_v22, 1  ;;  %vm44_vm1 = vcmp.eq.s32.totalorder %v43_v22, 0 }
   0x5   :  { %v20_v4 = vand.u32 2147483647, %v19_v2 }
   0x7   :  { %v21_v5 = vmul.f32 %v20_v4, %v18_v3 }
   0x9   :  { %24 = vadd.xlane.f32.xlu0 %v21_v5  ;;  %v22_v6 = vsub.f32 %v20_v4, %v21_v5 }
   0xb   :  { %23 = vst [vmem:[%s106_s3] sm:$0xff] %v22_v6 }
   0xd   :  { %33 = vadd.xlane.f32.xlu0 %v18_v3 }
  0x96   :  { %v25_v7 = vpop.xlane.xlu0 %24 }
  0x97   :  { %v26_v8 = vrot.slane %v25_v7, 4 }
  0x99   :  { %v27_v9 = vadd.f32 %v26_v8, %v25_v7 }
  0x9a   :  { %v34_v10 = vpop.xlane.xlu0 %33 }
  0x9b   :  { %v28_v11 = vrot.slane %v27_v9, 2  ;;  %v35_v12 = vrot.slane %v34_v10, 4 }
  0x9d   :  { %v36_v13 = vadd.f32 %v35_v12, %v34_v10  ;;  %v29_v14 = vadd.f32 %v28_v11, %v27_v9 }
  0x9f   :  { %v37_v15 = vrot.slane %v36_v13, 2  ;;  %v30_v16 = vrot.slane %v29_v14, 1 }
  0xa1   :  { %v38_v17 = vadd.f32 %v37_v15, %v36_v13  ;;  %v31_v18 = vadd.f32 %v30_v16, %v29_v14 }
  0xa3   :  { %59 = vpush %v31_v18  ;;  %v39_v19 = vrot.slane %v38_v17, 1 }
  0xa5   :  { %v40_v20 = vadd.f32 %v39_v19, %v38_v17 }
  0xa7   :  { %61 = vpush %v40_v20 }
  0xd4   :  { %s60_s0 = spop %59 }
  0xd5   :  { %v48_v24 = vstv %s60_s0 }
  0xd8   :  { %s62_s1 = spop %61 }
  0xd9   :  { %v46_v23 = vstv %s62_s1 }
  0xda   :  { %v47_v25 = vsel %vm45_vm0, %v46_v23, 0.0 }
  0xdb   :  { %v49_v26 = vsel %vm44_vm1, %v48_v24, %v47_v25 }
  0xdc   :  { %50 = vst [vmem:[%s107_s4] sm:$0xff] %v49_v26 }

</bundles_post_ra>
